<compile_context>
chip_gen: v7x
topology: tpu7x:2x2x1
jax: 0.10.0
libtpu: 0.0.40
codegen_flags: <defaults>
</compile_context>

<pallas_src>
import jax
import jax.numpy as jnp
from jax.experimental import pallas as pl
from jax.experimental.pallas import tpu as pltpu

_LANE = 128
_MAX_COLS = 8192
_MIN_GRID_STEPS = 8            # >= 4 steps per v7x TensorCore; 8 preferred
_SMALL_BYTES = 64 * 1024       # below this a standalone kernel launch loses
_VMEM_LIMIT_BYTES = 48 * 1024 * 1024


def _relu_kernel(x_ref, o_ref):
    # Pure VPU elementwise max(x, 0); NaN propagates like torch.maximum.
    o_ref[...] = jnp.maximum(x_ref[...], jnp.zeros((), dtype=x_ref.dtype))


def _round_up(a, b):
    return pl.cdiv(a, b) * b


def _choose_cols(n):
    """Largest multiple of 128 that divides n (capped at _MAX_COLS), or None."""
    if n % _LANE != 0:
        return None
    m = n // _LANE
    for d in range(min(m, _MAX_COLS // _LANE), 0, -1):
        if m % d == 0:
            return d * _LANE
    return _LANE


def rectifier(x, *, target_block_bytes=4 * 1024 * 1024, alias_input=False):
    """ReLU (torch.maximum(x, 0)) via a Pallas TPU kernel. Any shape/dtype."""
    orig_shape = x.shape
    dtype = x.dtype
    n = x.size
    if n == 0:
        return x

    itemsize = jnp.dtype(dtype).itemsize

    # Tiny tensors: fixed pallas_call launch + per-step overhead dominates and
    # XLA fuses the ReLU into neighboring ops for free.
    if n * itemsize <= _SMALL_BYTES:
        return jnp.maximum(x, jnp.zeros((), dtype=dtype))

    cols = _choose_cols(n)
    if cols is None:
        # Ragged element count (not a multiple of 128): plain XLA already does
        # the optimal single read+write HBM pass; the old pad->kernel->slice
        # path cost ~3 passes.
        return jnp.maximum(x, jnp.zeros((), dtype=dtype))

    # Contiguous row-major reshape -> lane-dense 2-D view (no data movement
    # for a default-layout array).
    x2d = x.reshape(n // cols, cols)
    rows = x2d.shape[0]

    # Native sublane packing tile: f32 -> 8, bf16 -> 16, int8/fp8 -> 32.
    sub = max(8, 32 // itemsize)

    if rows <= sub:
        block_rows = rows              # block == full array dim is always legal
    else:
        # Cap 1: per-block byte budget (~target_block_bytes).
        want = max(1, target_block_bytes // (cols * itemsize))
        block_rows = max(sub, (want // sub) * sub)
        # Cap 2: ensure >= _MIN_GRID_STEPS grid steps so both v7x TensorCores
        # get work and each core reaches steady-state double buffering.
        per_step = max(sub, _round_up(pl.cdiv(rows, _MIN_GRID_STEPS), sub))
        block_rows = min(block_rows, per_step)
        # Cap 3: never exceed the array (largest sub-multiple <= rows; the
        # final partial block, if any, is masked automatically by Pallas).
        block_rows = min(block_rows, max(sub, (rows // sub) * sub))

    grid = (pl.cdiv(rows, block_rows),)

    out2d = pl.pallas_call(
        _relu_kernel,
        out_shape=jax.ShapeDtypeStruct(x2d.shape, dtype),
        grid=grid,
        in_specs=[pl.BlockSpec((block_rows, cols), lambda i: (i, 0))],
        out_specs=pl.BlockSpec((block_rows, cols), lambda i: (i, 0)),
        compiler_params=pltpu.CompilerParams(
            dimension_semantics=("parallel",),
            vmem_limit_bytes=_VMEM_LIMIT_BYTES,
        ),
        cost_estimate=pl.CostEstimate(
            flops=n, transcendentals=0, bytes_accessed=2 * n * itemsize),
        input_output_aliases=({0: 0} if alias_input else {}),
    )(x2d)

    return out2d.reshape(orig_shape)


if __name__ == "__main__":
    key = jax.random.PRNGKey(0)
    k1, k2, k3 = jax.random.split(key, 3)

    # 1) Medium DQN conv activation (Atari-style 84x84 frames) -> exercises the
    #    Pallas kernel path (2*32*84*84 = 451,584 elems, multiple of 128).
    x_big = jax.random.normal(k1, (2, 32, 84, 84), dtype=jnp.float32)
    y_big = rectifier(x_big)
    jax.block_until_ready(y_big)
    assert y_big.shape == x_big.shape and y_big.dtype == x_big.dtype
    assert bool(jnp.all(y_big == jnp.maximum(x_big, 0.0)))

    # 2) Small NCHW feature map -> tiny-input short-circuit (fused XLA path).
    x_small = jax.random.normal(k2, (2, 4, 16, 16), dtype=jnp.float32)
    y_small = rectifier(x_small)
    jax.block_until_ready(y_small)
    assert y_small.shape == x_small.shape and y_small.dtype == x_small.dtype
    assert bool(jnp.all(y_small == jnp.maximum(x_small, 0.0)))

    # 3) Ragged element count (3*5*7 = 105, not a multiple of 128) -> fallback.
    x_rag = jax.random.normal(k3, (3, 5, 7), dtype=jnp.float32)
    y_rag = rectifier(x_rag)
    jax.block_until_ready(y_rag)
    assert y_rag.shape == x_rag.shape and y_rag.dtype == x_rag.dtype
    assert bool(jnp.all(y_rag == jnp.maximum(x_rag, 0.0)))

    print("KERNEL_OK")
</pallas_src>

<mosaic_0001>
module attributes {stable_mosaic.version = 11 : i64} {
  func.func @_relu_kernel(%arg0: i32, %arg1: memref<8x8064xf32, #tpu.memory_space<vmem>>, %arg2: memref<8x8064xf32, #tpu.memory_space<vmem>>) attributes {dimension_semantics = [#tpu.dimension_semantics<parallel>], iteration_bounds = array<i64: 7>, scalar_prefetch = 0 : i64, scratch_operands = 0 : i64, tpu.core_type = #tpu.core_type<tc>, window_params = [{transform_indices = @transform_0, window_bounds = array<i64: 8, 8064>}, {transform_indices = @transform_1, window_bounds = array<i64: 8, 8064>}]} {
    %c0 = arith.constant 0 : index
    %c0_0 = arith.constant 0 : index
    %0 = vector.load %arg1[%c0, %c0_0] : memref<8x8064xf32, #tpu.memory_space<vmem>>, vector<8x8064xf32>
    %cst = arith.constant 0.000000e+00 : f32
    %1 = vector.broadcast %cst : f32 to vector<8x8064xf32>
    %2 = arith.maximumf %0, %1 : vector<8x8064xf32>
    %c0_1 = arith.constant 0 : index
    %c0_2 = arith.constant 0 : index
    %3 = vector.load %arg2[%c0_1, %c0_2] : memref<8x8064xf32, #tpu.memory_space<vmem>>, vector<8x8064xf32>
    tpu.vector_store %arg2[%c0_1, %c0_2], %2 {strides = array<i32>} : memref<8x8064xf32, #tpu.memory_space<vmem>>, vector<8x8064xf32>,
    return
  }
  func.func @transform_0(%arg0: i32) -> (i32, i32) {
    %c0_i32 = arith.constant 0 : i32
    %c0_i32_0 = arith.constant 0 : i32
    return %arg0, %c0_i32 : i32, i32
  }
  func.func @transform_1(%arg0: i32) -> (i32, i32) {
    %c0_i32 = arith.constant 0 : i32
    %c0_i32_0 = arith.constant 0 : i32
    return %arg0, %c0_i32 : i32, i32
  }
}

</mosaic_0001>

<bundles_post_ra>
// kernel: tpu_custom_call.1
= control target key start
LH: loop header
LB: loop body
LE: loop exit
PB: predicated region body
PF: predicated region fallthrough
CT: control target
= control target key end

     0   :  { %6 = vsyncpa [#allocation3], 0  ;;  %s863_s0 = inlined_call_operand.hbm [shape: f32[56,8064], index: 0, kind: input, shape index: {}]   ;;  %s864_s1 = inlined_call_operand.hbm [shape: f32[56,8064], index: 1, kind: output, shape index: {}]  }
   0x1   :  { %8 = vsyncpa [#allocation3 + $0x1], 0 }
   0x2   :  { %9 = vsyncpa [#allocation4], 0 }
   0x3   :  { %11 = vsyncpa [#allocation4 + $0x1], 0  ;;  %s575_s6 = smov 0   ;;  %s577_s7 = smov 0  }
   0x4   :  { %s579_s8 = smov 0   ;;  %s581_s9 = smov 0  }
   0x5 LB: > { %s596_s10 = sadd.s32 4294967295, %s561_s9   ;;  %s407_s11 = sadd.s32 4294967294, %s561_s9   ;;  %s561_s9 = sphi %s581_s9, %s877_s9   ;;  %s557_s8 = sphi %s579_s8, %s876_s8   ;;  %s553_s7 = sphi %s577_s7, %s875_s7   ;;  %s549_s6 = sphi %s575_s6, %s874_s6  }
   0x6   : > { %s600_s12 = sadd.s32 1, %s561_s9   ;;  %s24_s13 = sadd.s32 1, %s557_s8 }
   0x7   : > { %s21_s14 = ssub.s32 %s561_s9, %s600_s12  ;;  %p31_p0 = scmp.ne.s32.totalorder %s557_s8, %s553_s7 }
   0x8   : > { %p22_p1 = scmp.eq.s32.totalorder %s21_s14, 0  ;;  %p32_p2 = scmp.eq.s32.totalorder %s561_s9, 0 }
   0x9   : > { %p37_p3 = scmp.ne.s32.totalorder %s553_s7, %s549_s6  ;;  %p38_p4 = scmp.eq.s32.totalorder %s596_s10, 0 }
   0xa   : > { %s612_s15 = scalar_select %p22_p1, %s557_s8, %s24_s13  }
   0xb   : > { %p33_p5 = por %p32_p2, %p31_p0  ;;  %p614_p6 = por %p38_p4, %p37_p3 }
   0xc   : > { %p61_p7 = scmp.eq.s32.totalorder %s596_s10, 6  ;;  %p67_p8 = scmp.eq.s32.totalorder %s407_s11, 6 }
   0xd   : > { %p431_p9 = scmp.lt.s32.totalorder %s561_s9, 7  ;;  %s87_s19 = sand.u32 1, %s557_s8  }
   0xe   : > { %p620_p10 = por %p61_p7, %p31_p0  ;;  %p624_p11 = por %p67_p8, %p37_p3 }
   0xf   : > { %s416_s20 = smul.u32 8064, %s561_s9  ;;  %p635_p12 = pnand %p431_p9, %p33_p5 }
  0x10   : > { %s867_s17 = scalar_select %p620_p10, 1, 0 }
  0x11   : > { %s868_s18 = scalar_select %p624_p11, 1, 0 }
  0x12   : > { %s415_s21 = smul.u32 504, %s87_s19  ;;  %s633_s24 = scalar_lea.hbm %s863_s0, %s416_s20 }
  0x13   : > { %s88_s28 = scalar_lea.sflag [#allocation3], %s87_s19  ;;  %s465_s29 = scalar_lea.hbm %s633_s24, 8064 }
  0x14   : > { %s91_s26 = scalar_lea.vmem [#allocation2], %s415_s21  ;;  %p466_p1 = scmp.ne.s32.totalorder %s633_s24, %s465_s29 }
  0x15   : > { %s99_s27 = sshll.u32 %s91_s26, 4  ;;  %p467_p2 = pneg %p635_p12  ;;  %s640_s27 = int_to_ptr.vmem [resolvable:$true] %s99_s27 }
  0x16   : > { %s470_s3 = scalar_lea.hbm %s863_s0, 56448  ;;  %p471_p5 = scmp.lt.u32.totalorder %s633_s24, %s863_s0 }
  0x17   : > { %p468_p3 = pnand %p467_p2, %p466_p1  ;;  %p472_p7 = scmp.lt.u32.totalorder %s470_s3, %s465_s29 }
  0x18   : > { %p474_p9 = scmp.lt.u32.totalorder %s465_s29, %s633_s24 }
  0x19   : > { %p469_p4 = pneg %p468_p3  ;;  %p473_p8 = por %p472_p7, %p471_p5 }
  0x1b   : > { %p475_p13 = por %p474_p9, %p473_p8 }
  0x1d   : > { %p476_p0 = pnand %p475_p13, %p469_p4 }
  0x1f   : > { %479 = shalt.err (!%p476_p0)
}
  0x20   : > { %s480_s11 = scalar_lea.vmem %s640_s27, 8064  ;;  %s563_s13 = smov [#allocation2]  }
  0x21   : > { %p481_p1 = scmp.ne.s32.totalorder %s640_s27, %s480_s11  ;;  %s485_s14 = sshll.u32 %s563_s13, 4  ;;  %s486_s14 = int_to_ptr.vmem [resolvable:$false] %s485_s14 }
  0x22   : > { %s487_s19 = scalar_lea.vmem %s486_s14, 16128  ;;  %p488_p10 = scmp.lt.s32.totalorder %s640_s27, %s486_s14 }
  0x23   : > { %p483_p3 = pnand %p481_p1, %p467_p2  ;;  %p489_p5 = scmp.lt.s32.totalorder %s487_s19, %s480_s11 }
  0x25   : > { %p484_p11 = pneg %p483_p3  ;;  %p490_p7 = por %p489_p5, %p488_p10 }
  0x27   : > { %p491_p8 = pnand %p490_p7, %p484_p11 }
  0x29   : > { %494 = shalt.err (!%p491_p8)
}
  0x2a   : > { %426 = dma.hbm_to_vmem [thread:$0]  (!%p635_p12), %s633_s24, 8064, %s640_s27, %s88_s28  }
  0x2b   : > { %p870_p13 = scmp.lt.s32.totalorder %s561_s9, 8  ;;  %p871_p0 = scmp.ge.s32.totalorder %s561_s9, 1 }
  0x2d   : > { %p105_p2 = pnand %p871_p0, %p870_p13 }
  0x2e   : > { %s673_s20 = sand.u32 (!%p105_p2), 1, %s553_s7  }
  0x2f   : > { %108 = sbr.rel (%p105_p2) target bundleno = 109 (0x6d), region = 24  ;;  %s111_s22 = scalar_lea.sflag (!%p105_p2), [#allocation3], %s673_s20 }
  0x30   : > { %s417_s21 = smul.u32 (!%p105_p2), 504, %s673_s20 }
  0x32   : > { %s677_s23 = scalar_lea.vmem (!%p105_p2), [#allocation2], %s417_s21 }
  0x36   : > { %540 = dma.done.wait (%p614_p6), %s111_s22, 8064  }
  0x37   : > { %542 = vsyncadd (%p614_p6), %s111_s22, 4294959232  ;;  %v133_v0 = vld [vmem:[%s677_s23] sm:$0xff]  ;;  %v134_v1 = vld [vmem:[%s677_s23 + $0x8] sm:$0xff]  ;;  %s418_s24 = smul.u32 8064, %s596_s10  ;;  %s687_s25 = scalar_lea.vmem [#allocation5], %s417_s21 }
  0x38   : > { %v135_v2 = vld [vmem:[%s677_s23 + $0x10] sm:$0xff]  ;;  %s337_s16 = sshll.u32 %s687_s25, 4  ;;  %v196_v3 = vmax.f32 %v133_v0, 0.0  ;;  %v197_v4 = vmax.f32 %v134_v1, 0.0  ;;  %v136_v6 = vld [vmem:[%s677_s23 + $0x18] sm:$0xff]  ;;  %v137_v7 = vld [vmem:[%s677_s23 + $0x20] sm:$0xff]  ;;  %s816_s16 = int_to_ptr.vmem [resolvable:$true] %s337_s16 }
  0x39   : > { %v198_v5 = vmax.f32 %v135_v2, 0.0  ;;  %v138_v8 = vld [vmem:[%s677_s23 + $0x28] sm:$0xff]  ;;  %v199_v9 = vmax.f32 %v136_v6, 0.0  ;;  %v200_v10 = vmax.f32 %v137_v7, 0.0  ;;  %v139_v12 = vld [vmem:[%s677_s23 + $0x30] sm:$0xff]  ;;  %v140_v13 = vld [vmem:[%s677_s23 + $0x38] sm:$0xff]  ;;  %s812_s28 = scalar_lea.hbm %s864_s1, %s418_s24 }
  0x3a   : > { %v201_v11 = vmax.f32 %v138_v8, 0.0  ;;  %v141_v14 = vld [vmem:[%s677_s23 + $0x40] sm:$0xff]  ;;  %259 = vst [vmem:[%s687_s25] sm:$0xff] %v196_v3  ;;  %260 = vst [vmem:[%s687_s25 + $0x8] sm:$0xff] %v197_v4  ;;  %v202_v15 = vmax.f32 %v139_v12, 0.0  ;;  %v203_v16 = vmax.f32 %v140_v13, 0.0  ;;  %v142_v18 = vld [vmem:[%s677_s23 + $0x48] sm:$0xff] }
  0x3b   : > { %261 = vst [vmem:[%s687_s25 + $0x10] sm:$0xff] %v198_v5  ;;  %v204_v17 = vmax.f32 %v141_v14, 0.0  ;;  %v143_v19 = vld [vmem:[%s677_s23 + $0x50] sm:$0xff]  ;;  %v144_v20 = vld [vmem:[%s677_s23 + $0x58] sm:$0xff]  ;;  %262 = vst [vmem:[%s687_s25 + $0x18] sm:$0xff] %v199_v9  ;;  %v205_v21 = vmax.f32 %v142_v18, 0.0 }
  0x3c   : > { %263 = vst [vmem:[%s687_s25 + $0x20] sm:$0xff] %v200_v10  ;;  %264 = vst [vmem:[%s687_s25 + $0x28] sm:$0xff] %v201_v11  ;;  %v206_v22 = vmax.f32 %v143_v19, 0.0  ;;  %v207_v23 = vmax.f32 %v144_v20, 0.0  ;;  %v145_v24 = vld [vmem:[%s677_s23 + $0x60] sm:$0xff]  ;;  %v146_v25 = vld [vmem:[%s677_s23 + $0x68] sm:$0xff] }
  0x3d   : > { %v147_v26 = vld [vmem:[%s677_s23 + $0x70] sm:$0xff]  ;;  %265 = vst [vmem:[%s687_s25 + $0x30] sm:$0xff] %v202_v15  ;;  %266 = vst [vmem:[%s687_s25 + $0x38] sm:$0xff] %v203_v16  ;;  %v208_v27 = vmax.f32 %v145_v24, 0.0  ;;  %v209_v28 = vmax.f32 %v146_v25, 0.0  ;;  %v148_v30 = vld [vmem:[%s677_s23 + $0x78] sm:$0xff] }
  0x3e   : > { %267 = vst [vmem:[%s687_s25 + $0x40] sm:$0xff] %v204_v17  ;;  %v210_v29 = vmax.f32 %v147_v26, 0.0  ;;  %v149_v31 = vld [vmem:[%s677_s23 + $0x80] sm:$0xff]  ;;  %v150_v32 = vld [vmem:[%s677_s23 + $0x88] sm:$0xff]  ;;  %268 = vst [vmem:[%s687_s25 + $0x48] sm:$0xff] %v205_v21  ;;  %v211_v33 = vmax.f32 %v148_v30, 0.0 }
  0x3f   : > { %269 = vst [vmem:[%s687_s25 + $0x50] sm:$0xff] %v206_v22  ;;  %270 = vst [vmem:[%s687_s25 + $0x58] sm:$0xff] %v207_v23  ;;  %v212_v34 = vmax.f32 %v149_v31, 0.0  ;;  %v213_v35 = vmax.f32 %v150_v32, 0.0  ;;  %v151_v36 = vld [vmem:[%s677_s23 + $0x90] sm:$0xff]  ;;  %v152_v37 = vld [vmem:[%s677_s23 + $0x98] sm:$0xff] }
  0x40   : > { %v153_v38 = vld [vmem:[%s677_s23 + $0xa0] sm:$0xff]  ;;  %271 = vst [vmem:[%s687_s25 + $0x60] sm:$0xff] %v208_v27  ;;  %272 = vst [vmem:[%s687_s25 + $0x68] sm:$0xff] %v209_v28  ;;  %v214_v39 = vmax.f32 %v151_v36, 0.0  ;;  %v215_v40 = vmax.f32 %v152_v37, 0.0  ;;  %v154_v42 = vld [vmem:[%s677_s23 + $0xa8] sm:$0xff] }
  0x41   : > { %273 = vst [vmem:[%s687_s25 + $0x70] sm:$0xff] %v210_v29  ;;  %v216_v41 = vmax.f32 %v153_v38, 0.0  ;;  %v155_v43 = vld [vmem:[%s677_s23 + $0xb0] sm:$0xff]  ;;  %v156_v44 = vld [vmem:[%s677_s23 + $0xb8] sm:$0xff]  ;;  %274 = vst [vmem:[%s687_s25 + $0x78] sm:$0xff] %v211_v33  ;;  %v217_v45 = vmax.f32 %v154_v42, 0.0 }
  0x42   : > { %275 = vst [vmem:[%s687_s25 + $0x80] sm:$0xff] %v212_v34  ;;  %276 = vst [vmem:[%s687_s25 + $0x88] sm:$0xff] %v213_v35  ;;  %v218_v46 = vmax.f32 %v155_v43, 0.0  ;;  %v219_v47 = vmax.f32 %v156_v44, 0.0  ;;  %v157_v48 = vld [vmem:[%s677_s23 + $0xc0] sm:$0xff]  ;;  %v158_v49 = vld [vmem:[%s677_s23 + $0xc8] sm:$0xff] }
  0x43   : > { %v159_v50 = vld [vmem:[%s677_s23 + $0xd0] sm:$0xff]  ;;  %277 = vst [vmem:[%s687_s25 + $0x90] sm:$0xff] %v214_v39  ;;  %278 = vst [vmem:[%s687_s25 + $0x98] sm:$0xff] %v215_v40  ;;  %v220_v51 = vmax.f32 %v157_v48, 0.0  ;;  %v221_v52 = vmax.f32 %v158_v49, 0.0  ;;  %v160_v54 = vld [vmem:[%s677_s23 + $0xd8] sm:$0xff] }
  0x44   : > { %279 = vst [vmem:[%s687_s25 + $0xa0] sm:$0xff] %v216_v41  ;;  %v222_v53 = vmax.f32 %v159_v50, 0.0  ;;  %v161_v55 = vld [vmem:[%s677_s23 + $0xe0] sm:$0xff]  ;;  %v162_v56 = vld [vmem:[%s677_s23 + $0xe8] sm:$0xff]  ;;  %280 = vst [vmem:[%s687_s25 + $0xa8] sm:$0xff] %v217_v45  ;;  %v223_v57 = vmax.f32 %v160_v54, 0.0 }
  0x45   : > { %281 = vst [vmem:[%s687_s25 + $0xb0] sm:$0xff] %v218_v46  ;;  %282 = vst [vmem:[%s687_s25 + $0xb8] sm:$0xff] %v219_v47  ;;  %v224_v58 = vmax.f32 %v161_v55, 0.0  ;;  %v225_v59 = vmax.f32 %v162_v56, 0.0  ;;  %v163_v60 = vld [vmem:[%s677_s23 + $0xf0] sm:$0xff]  ;;  %v164_v61 = vld [vmem:[%s677_s23 + $0xf8] sm:$0xff] }
  0x46   : > { %v165_v62 = vld [vmem:[%s677_s23 + $0x100] sm:$0xff]  ;;  %283 = vst [vmem:[%s687_s25 + $0xc0] sm:$0xff] %v220_v51  ;;  %284 = vst [vmem:[%s687_s25 + $0xc8] sm:$0xff] %v221_v52  ;;  %v226_v63 = vmax.f32 %v163_v60, 0.0  ;;  %v227_v0 = vmax.f32 %v164_v61, 0.0  ;;  %v166_v2 = vld [vmem:[%s677_s23 + $0x108] sm:$0xff] }
  0x47   : > { %285 = vst [vmem:[%s687_s25 + $0xd0] sm:$0xff] %v222_v53  ;;  %v228_v1 = vmax.f32 %v165_v62, 0.0  ;;  %v167_v3 = vld [vmem:[%s677_s23 + $0x110] sm:$0xff]  ;;  %v168_v4 = vld [vmem:[%s677_s23 + $0x118] sm:$0xff]  ;;  %286 = vst [vmem:[%s687_s25 + $0xd8] sm:$0xff] %v223_v57  ;;  %v229_v5 = vmax.f32 %v166_v2, 0.0 }
  0x48   : > { %287 = vst [vmem:[%s687_s25 + $0xe0] sm:$0xff] %v224_v58  ;;  %288 = vst [vmem:[%s687_s25 + $0xe8] sm:$0xff] %v225_v59  ;;  %v230_v6 = vmax.f32 %v167_v3, 0.0  ;;  %v231_v7 = vmax.f32 %v168_v4, 0.0  ;;  %v169_v8 = vld [vmem:[%s677_s23 + $0x120] sm:$0xff]  ;;  %v170_v9 = vld [vmem:[%s677_s23 + $0x128] sm:$0xff] }
  0x49   : > { %v171_v10 = vld [vmem:[%s677_s23 + $0x130] sm:$0xff]  ;;  %289 = vst [vmem:[%s687_s25 + $0xf0] sm:$0xff] %v226_v63  ;;  %290 = vst [vmem:[%s687_s25 + $0xf8] sm:$0xff] %v227_v0  ;;  %v232_v11 = vmax.f32 %v169_v8, 0.0  ;;  %v233_v12 = vmax.f32 %v170_v9, 0.0  ;;  %v172_v14 = vld [vmem:[%s677_s23 + $0x138] sm:$0xff] }
  0x4a   : > { %291 = vst [vmem:[%s687_s25 + $0x100] sm:$0xff] %v228_v1  ;;  %v234_v13 = vmax.f32 %v171_v10, 0.0  ;;  %v173_v15 = vld [vmem:[%s677_s23 + $0x140] sm:$0xff]  ;;  %v174_v16 = vld [vmem:[%s677_s23 + $0x148] sm:$0xff]  ;;  %292 = vst [vmem:[%s687_s25 + $0x108] sm:$0xff] %v229_v5  ;;  %v235_v17 = vmax.f32 %v172_v14, 0.0 }
  0x4b   : > { %293 = vst [vmem:[%s687_s25 + $0x110] sm:$0xff] %v230_v6  ;;  %294 = vst [vmem:[%s687_s25 + $0x118] sm:$0xff] %v231_v7  ;;  %v236_v18 = vmax.f32 %v173_v15, 0.0  ;;  %v237_v19 = vmax.f32 %v174_v16, 0.0  ;;  %v175_v20 = vld [vmem:[%s677_s23 + $0x150] sm:$0xff]  ;;  %v176_v21 = vld [vmem:[%s677_s23 + $0x158] sm:$0xff] }
  0x4c   : > { %v177_v22 = vld [vmem:[%s677_s23 + $0x160] sm:$0xff]  ;;  %295 = vst [vmem:[%s687_s25 + $0x120] sm:$0xff] %v232_v11  ;;  %296 = vst [vmem:[%s687_s25 + $0x128] sm:$0xff] %v233_v12  ;;  %v238_v23 = vmax.f32 %v175_v20, 0.0  ;;  %v239_v24 = vmax.f32 %v176_v21, 0.0  ;;  %v178_v26 = vld [vmem:[%s677_s23 + $0x168] sm:$0xff] }
  0x4d   : > { %297 = vst [vmem:[%s687_s25 + $0x130] sm:$0xff] %v234_v13  ;;  %v240_v25 = vmax.f32 %v177_v22, 0.0  ;;  %v179_v27 = vld [vmem:[%s677_s23 + $0x170] sm:$0xff]  ;;  %v180_v28 = vld [vmem:[%s677_s23 + $0x178] sm:$0xff]  ;;  %298 = vst [vmem:[%s687_s25 + $0x138] sm:$0xff] %v235_v17  ;;  %v241_v29 = vmax.f32 %v178_v26, 0.0 }
  0x4e   : > { %299 = vst [vmem:[%s687_s25 + $0x140] sm:$0xff] %v236_v18  ;;  %300 = vst [vmem:[%s687_s25 + $0x148] sm:$0xff] %v237_v19  ;;  %v242_v30 = vmax.f32 %v179_v27, 0.0  ;;  %v243_v31 = vmax.f32 %v180_v28, 0.0  ;;  %v181_v32 = vld [vmem:[%s677_s23 + $0x180] sm:$0xff]  ;;  %v182_v33 = vld [vmem:[%s677_s23 + $0x188] sm:$0xff] }
  0x4f   : > { %v183_v34 = vld [vmem:[%s677_s23 + $0x190] sm:$0xff]  ;;  %301 = vst [vmem:[%s687_s25 + $0x150] sm:$0xff] %v238_v23  ;;  %302 = vst [vmem:[%s687_s25 + $0x158] sm:$0xff] %v239_v24  ;;  %v244_v35 = vmax.f32 %v181_v32, 0.0  ;;  %v245_v36 = vmax.f32 %v182_v33, 0.0  ;;  %v184_v38 = vld [vmem:[%s677_s23 + $0x198] sm:$0xff] }
  0x50   : > { %303 = vst [vmem:[%s687_s25 + $0x160] sm:$0xff] %v240_v25  ;;  %v246_v37 = vmax.f32 %v183_v34, 0.0  ;;  %v185_v39 = vld [vmem:[%s677_s23 + $0x1a0] sm:$0xff]  ;;  %v186_v40 = vld [vmem:[%s677_s23 + $0x1a8] sm:$0xff]  ;;  %304 = vst [vmem:[%s687_s25 + $0x168] sm:$0xff] %v241_v29  ;;  %v247_v41 = vmax.f32 %v184_v38, 0.0 }
  0x51   : > { %305 = vst [vmem:[%s687_s25 + $0x170] sm:$0xff] %v242_v30  ;;  %306 = vst [vmem:[%s687_s25 + $0x178] sm:$0xff] %v243_v31  ;;  %v248_v42 = vmax.f32 %v185_v39, 0.0  ;;  %v249_v43 = vmax.f32 %v186_v40, 0.0  ;;  %v187_v44 = vld [vmem:[%s677_s23 + $0x1b0] sm:$0xff]  ;;  %v188_v45 = vld [vmem:[%s677_s23 + $0x1b8] sm:$0xff] }
  0x52   : > { %v189_v46 = vld [vmem:[%s677_s23 + $0x1c0] sm:$0xff]  ;;  %307 = vst [vmem:[%s687_s25 + $0x180] sm:$0xff] %v244_v35  ;;  %308 = vst [vmem:[%s687_s25 + $0x188] sm:$0xff] %v245_v36  ;;  %v250_v47 = vmax.f32 %v187_v44, 0.0  ;;  %v251_v48 = vmax.f32 %v188_v45, 0.0  ;;  %v190_v50 = vld [vmem:[%s677_s23 + $0x1c8] sm:$0xff] }
  0x53   : > { %309 = vst [vmem:[%s687_s25 + $0x190] sm:$0xff] %v246_v37  ;;  %v252_v49 = vmax.f32 %v189_v46, 0.0  ;;  %v191_v51 = vld [vmem:[%s677_s23 + $0x1d0] sm:$0xff]  ;;  %v192_v52 = vld [vmem:[%s677_s23 + $0x1d8] sm:$0xff]  ;;  %310 = vst [vmem:[%s687_s25 + $0x198] sm:$0xff] %v247_v41  ;;  %v253_v53 = vmax.f32 %v190_v50, 0.0 }
  0x54   : > { %311 = vst [vmem:[%s687_s25 + $0x1a0] sm:$0xff] %v248_v42  ;;  %312 = vst [vmem:[%s687_s25 + $0x1a8] sm:$0xff] %v249_v43  ;;  %v254_v54 = vmax.f32 %v191_v51, 0.0  ;;  %v255_v55 = vmax.f32 %v192_v52, 0.0  ;;  %v193_v56 = vld [vmem:[%s677_s23 + $0x1e0] sm:$0xff]  ;;  %v194_v57 = vld [vmem:[%s677_s23 + $0x1e8] sm:$0xff] }
  0x55   : > { %v195_v58 = vld [vmem:[%s677_s23 + $0x1f0] sm:$0xff]  ;;  %313 = vst [vmem:[%s687_s25 + $0x1b0] sm:$0xff] %v250_v47  ;;  %314 = vst [vmem:[%s687_s25 + $0x1b8] sm:$0xff] %v251_v48  ;;  %v256_v59 = vmax.f32 %v193_v56, 0.0  ;;  %v257_v60 = vmax.f32 %v194_v57, 0.0  ;;  %s323_s29 = scalar_lea.sflag [#allocation4], %s673_s20 }
  0x56   : > { %315 = vst [vmem:[%s687_s25 + $0x1c0] sm:$0xff] %v252_v49  ;;  %v258_v61 = vmax.f32 %v195_v58, 0.0  ;;  %316 = vst [vmem:[%s687_s25 + $0x1c8] sm:$0xff] %v253_v53  ;;  %s495_s30 = scalar_lea.vmem %s816_s16, 8064  ;;  %p872_p10 = scmp.ne.s32.totalorder %s867_s17, 0 }
  0x57   : > { %317 = vst [vmem:[%s687_s25 + $0x1d0] sm:$0xff] %v254_v54  ;;  %318 = vst [vmem:[%s687_s25 + $0x1d8] sm:$0xff] %v255_v55  ;;  %p496_p6 = scmp.ne.s32.totalorder %s816_s16, %s495_s30  ;;  %s564_s10 = smov [#allocation5]  }
  0x58   : > { %319 = vst [vmem:[%s687_s25 + $0x1e0] sm:$0xff] %v256_v59  ;;  %320 = vst [vmem:[%s687_s25 + $0x1e8] sm:$0xff] %v257_v60  ;;  %s499_s2 = sshll.u32 %s564_s10, 4  ;;  %s500_s2 = int_to_ptr.vmem [resolvable:$false] %s499_s2 }
  0x59   : > { %321 = vst [vmem:[%s687_s25 + $0x1f0] sm:$0xff] %v258_v61  ;;  %p497_p11 = pnand %p496_p6, %p872_p10  ;;  %s501_s3 = scalar_lea.vmem %s500_s2, 16128 }
  0x5a   : > { %p502_p4 = scmp.lt.s32.totalorder %s816_s16, %s500_s2  ;;  %p503_p9 = scmp.lt.s32.totalorder %s501_s3, %s495_s30 }
  0x5b   : > { %p498_p12 = pneg %p497_p11 }
  0x5c   : > { %p504_p1 = por %p503_p9, %p502_p4 }
  0x5e   : > { %p505_p3 = pnand %p504_p1, %p498_p12 }
  0x60   : > { %508 = shalt.err (!%p505_p3)
}
  0x61   : > { %s509_s4 = scalar_lea.hbm %s812_s28, 8064  ;;  %s513_s13 = scalar_lea.hbm %s864_s1, 56448 }
  0x62   : > { %p510_p5 = scmp.ne.s32.totalorder %s812_s28, %s509_s4  ;;  %p514_p13 = scmp.lt.u32.totalorder %s812_s28, %s864_s1 }
  0x63   : > { %p515_p0 = scmp.lt.u32.totalorder %s513_s13, %s509_s4  ;;  %p517_p6 = scmp.lt.u32.totalorder %s509_s4, %s812_s28 }
  0x64   : > { %p511_p7 = pnand %p510_p5, %p872_p10 }
  0x65   : > { %p516_p2 = por %p515_p0, %p514_p13 }
  0x66   : > { %p512_p8 = pneg %p511_p7 }
  0x67   : > { %p518_p11 = por %p517_p6, %p516_p2 }
  0x69   : > { %p519_p12 = pnand %p518_p11, %p512_p8 }
  0x6b   : > { %522 = shalt.err (!%p519_p12)
}
  0x6c   : > { %421 = dma.vmem_to_hbm [thread:$0]  (%p872_p10), %s816_s16, 8064, %s812_s28, %s323_s29  }
  0x6d PF: > { %p432_p4 = scmp.ge.s32.totalorder %s561_s9, 2  ;;  %s349_s20 = sand.u32 1, %s549_s6  }
  0x6e   : > { %p873_p9 = scmp.ne.s32.totalorder %s868_s18, 0  ;;  %s350_s21 = scalar_lea.sflag [#allocation4], %s349_s20 }
  0x70   : > { %p428_p1 = pnand %p432_p4, %p873_p9 }
  0x72   : > { %544 = dma.done.wait (!%p428_p1), %s350_s21, 8064  }
  0x73   : > { %546 = vsyncadd (!%p428_p1), %s350_s21, 4294959232  ;;  %p14_p3 = scmp.ge.s32.totalorder %s600_s12, 9   ;;  %s874_s6 = smov %s553_s7 }
  0x74   : > { %s875_s7 = smov %s557_s8  ;;  %s876_s8 = smov %s612_s15 }
  0x75   : > { %s877_s9 = smov %s600_s12  ;;  %16 = sbr.rel (!%p14_p3) target bundleno = 5 (0x5), region = 69 }
  0x7c   :  { %355 = vsyncpa [#allocation3], 1 }
  0x7d   :  { %357 = vsyncpa [#allocation3 + $0x1], 1 }
  0x7e   :  { %358 = vsyncpa [#allocation4], 1 }
  0x7f   :  { %360 = vsyncpa [#allocation4 + $0x1], 1 }

</bundles_post_ra>
